<compile_context>
chip_gen: v6e
topology: v6e:2x2x1
jax: 0.10.0
libtpu: 0.0.40
codegen_flags: <defaults>
</compile_context>

<pallas_src>
import jax
import jax.numpy as jnp
import numpy as np
from jax import lax
from jax.experimental import pallas as pl
from jax.experimental.pallas import tpu as pltpu


def _multitask_fused_kernel(x_ref, wbT_ref, bb_ref, wh_ref, bh_ref, out_ref):
    # x_ref:   (NB, C, S)  NCHW flattened over spatial dims (S on lanes)
    # wbT_ref: (F, C)      base 1x1-conv weight, transposed
    # bb_ref:  (F, 1)      base bias (column)
    # wh_ref:  (F, K)      head weight (both heads concatenated when fused)
    # bh_ref:  (1, K)      head bias (row)
    # out_ref: (NB, K)     logits
    nb = x_ref.shape[0]
    wbT = wbT_ref[...]                                        # (F, C)
    bb = bb_ref[...]                                          # (F, 1)

    cols = []
    for n in range(nb):                                       # static unroll (NB small)
        # 1x1 conv over channels == (F, C) @ (C, S) matmul on the MXU.
        h = jnp.dot(wbT, x_ref[n], preferred_element_type=jnp.float32)   # (F, S)
        h = jnp.maximum(h + bb, 0.0)                          # bias + ReLU
        # Global average pool over spatial positions (lane-axis reduction).
        cols.append(jnp.mean(h, axis=1, keepdims=True))       # (F, 1)

    feat_cols = jnp.concatenate(cols, axis=1) if nb > 1 else cols[0]     # (F, NB)

    # Batched Linear head: contract over F (trans-A matmul) -> (NB, K).
    logits = lax.dot_general(
        feat_cols, wh_ref[...],
        dimension_numbers=(((0,), (0,)), ((), ())),
        preferred_element_type=jnp.float32) + bh_ref[...]

    out_ref[...] = logits                                     # single lane-dense store


def _fused_head_call(x_ncs, base_wT, base_b_col, head_w, head_b_row):
    nb, c, s = x_ncs.shape
    f = base_wT.shape[0]
    k = head_w.shape[1]
    return pl.pallas_call(
        _multitask_fused_kernel,
        out_shape=jax.ShapeDtypeStruct((nb, k), jnp.float32),
        grid_spec=pltpu.PrefetchScalarGridSpec(
            num_scalar_prefetch=0,
            grid=(1,),                                        # whole problem in one step
            in_specs=[
                pl.BlockSpec((nb, c, s), lambda i: (0, 0, 0)),   # full batch, NCHW layout
                pl.BlockSpec((f, c), lambda i: (0, 0)),          # base conv weight^T
                pl.BlockSpec((f, 1), lambda i: (0, 0)),          # base conv bias
                pl.BlockSpec((f, k), lambda i: (0, 0)),          # head weight(s)
                pl.BlockSpec((1, k), lambda i: (0, 0)),          # head bias(es)
            ],
            out_specs=pl.BlockSpec((nb, k), lambda i: (0, 0)),
        ),
        compiler_params=pltpu.CompilerParams(
            dimension_semantics=("arbitrary",)),
    )(x_ncs, base_wT, base_b_col, head_w, head_b_row)


def multitask_forward(params, target_inputs, source_inputs=None):
    """Mirror of MultiTaskModel.forward (model_type='resnet50')."""
    f32 = jnp.float32
    wbT = jnp.transpose(params["base_w"]).astype(f32)            # (F, C)
    bb = params["base_b"].reshape(-1, 1).astype(f32)             # (F, 1)

    n, c, h, w = target_inputs.shape
    s = h * w
    xt = target_inputs.reshape(n, c, s).astype(f32)              # pure reshape, no transpose
    kt = params["fc_target_w"].shape[1]

    if source_inputs is None:
        return _fused_head_call(
            xt, wbT, bb,
            params["fc_target_w"].astype(f32),
            params["fc_target_b"].reshape(1, -1).astype(f32))

    ns = source_inputs.shape[0]
    xs = source_inputs.reshape(ns, c, s).astype(f32)
    ks = params["fc_source_w"].shape[1]

    # Fuse both heads into a single pallas_call: shared base pass over the
    # concatenated batch, heads concatenated along the output dimension.
    x_all = jnp.concatenate([xt, xs], axis=0)                    # (n+ns, C, S)
    wh = jnp.concatenate([params["fc_target_w"],
                          params["fc_source_w"]], axis=1).astype(f32)   # (F, kt+ks)
    bh = jnp.concatenate([params["fc_target_b"],
                          params["fc_source_b"]], axis=0).reshape(1, -1).astype(f32)

    logits = _fused_head_call(x_all, wbT, bb, wh, bh)            # (n+ns, kt+ks)
    target_outputs = logits[:n, :kt]
    source_outputs = logits[n:, kt:kt + ks]
    return target_outputs, source_outputs


def _reference_head(x_nchw, base_w, base_b, head_w, head_b):
    """Pure-JAX reference for verification."""
    n, c, hgt, wid = x_nchw.shape
    x = jnp.transpose(x_nchw, (0, 2, 3, 1)).reshape(n, hgt * wid, c)
    h = jnp.maximum(jnp.einsum("nsc,cf->nsf", x, base_w) + base_b[None, None, :], 0.0)
    feat = jnp.mean(h, axis=1)             # global avg pool + flatten
    return feat @ head_w + head_b[None, :]


if __name__ == "__main__":
    # Small shapes: batch=2, channels=4, spatial=16x16, hidden=32.
    N, C_IN, H, W = 2, 4, 16, 16
    HIDDEN = 32
    NUM_TARGET, NUM_SOURCE = 10, 16

    key = jax.random.PRNGKey(0)
    k_xt, k_xs, k_bw, k_bb, k_tw, k_tb, k_sw, k_sb = jax.random.split(key, 8)

    params = {
        # Synthetic deterministic "base" (stand-in for resnet50 children[:-1]).
        "base_w": jax.random.normal(k_bw, (C_IN, HIDDEN), jnp.float32) * 0.1,
        "base_b": jax.random.normal(k_bb, (HIDDEN,), jnp.float32) * 0.1,
        # Linear heads (stored as (in_features, out_features)).
        "fc_target_w": jax.random.normal(k_tw, (HIDDEN, NUM_TARGET), jnp.float32) * 0.1,
        "fc_target_b": jax.random.normal(k_tb, (NUM_TARGET,), jnp.float32) * 0.1,
        "fc_source_w": jax.random.normal(k_sw, (HIDDEN, NUM_SOURCE), jnp.float32) * 0.1,
        "fc_source_b": jax.random.normal(k_sb, (NUM_SOURCE,), jnp.float32) * 0.1,
    }

    target_inputs = jax.random.normal(k_xt, (N, C_IN, H, W), jnp.float32)
    source_inputs = jax.random.normal(k_xs, (N, C_IN, H, W), jnp.float32)

    # Path 1: source_inputs=None -> single output.
    tgt_only = multitask_forward(params, target_inputs)
    tgt_only = jax.block_until_ready(tgt_only)

    # Path 2: both inputs -> tuple of outputs (single fused pallas_call).
    tgt, src = multitask_forward(params, target_inputs, source_inputs)
    tgt = jax.block_until_ready(tgt)
    src = jax.block_until_ready(src)

    # Verify against pure-JAX reference.
    ref_tgt = _reference_head(target_inputs, params["base_w"], params["base_b"],
                              params["fc_target_w"], params["fc_target_b"])
    ref_src = _reference_head(source_inputs, params["base_w"], params["base_b"],
                              params["fc_source_w"], params["fc_source_b"])

    assert tgt_only.shape == (N, NUM_TARGET)
    assert tgt.shape == (N, NUM_TARGET) and src.shape == (N, NUM_SOURCE)
    np.testing.assert_allclose(np.asarray(tgt_only), np.asarray(ref_tgt),
                               rtol=1e-5, atol=1e-5)
    np.testing.assert_allclose(np.asarray(tgt), np.asarray(ref_tgt),
                               rtol=1e-5, atol=1e-5)
    np.testing.assert_allclose(np.asarray(src), np.asarray(ref_src),
                               rtol=1e-5, atol=1e-5)

    print("KERNEL_OK")
</pallas_src>

<mosaic_0001>
module attributes {stable_mosaic.version = 11 : i64} {
  func.func @_multitask_fused_kernel(%arg0: i32, %arg1: memref<2x4x256xf32, #tpu.memory_space<vmem>>, %arg2: memref<32x4xf32, #tpu.memory_space<vmem>>, %arg3: memref<32x1xf32, #tpu.memory_space<vmem>>, %arg4: memref<32x10xf32, #tpu.memory_space<vmem>>, %arg5: memref<1x10xf32, #tpu.memory_space<vmem>>, %arg6: memref<2x10xf32, #tpu.memory_space<vmem>>) attributes {dimension_semantics = [#tpu.dimension_semantics<arbitrary>], iteration_bounds = array<i64: 1>, scalar_prefetch = 0 : i64, scratch_operands = 0 : i64, tpu.core_type = #tpu.core_type<tc>, window_params = [{pipeline_mode = #tpu.pipeline_mode<synchronous>, transform_indices = @transform_0, window_bounds = array<i64: 2, 4, 256>}, {pipeline_mode = #tpu.pipeline_mode<synchronous>, transform_indices = @transform_1, window_bounds = array<i64: 32, 4>}, {pipeline_mode = #tpu.pipeline_mode<synchronous>, transform_indices = @transform_2, window_bounds = array<i64: 32, 1>}, {pipeline_mode = #tpu.pipeline_mode<synchronous>, transform_indices = @transform_3, window_bounds = array<i64: 32, 10>}, {pipeline_mode = #tpu.pipeline_mode<synchronous>, transform_indices = @transform_4, window_bounds = array<i64: 1, 10>}, {pipeline_mode = #tpu.pipeline_mode<synchronous>, transform_indices = @transform_5, window_bounds = array<i64: 2, 10>}]} {
    %c0 = arith.constant 0 : index
    %c0_0 = arith.constant 0 : index
    %0 = vector.load %arg2[%c0, %c0_0] : memref<32x4xf32, #tpu.memory_space<vmem>>, vector<32x4xf32>
    %c0_1 = arith.constant 0 : index
    %c0_2 = arith.constant 0 : index
    %1 = vector.load %arg3[%c0_1, %c0_2] : memref<32x1xf32, #tpu.memory_space<vmem>>, vector<32x1xf32>
    %c0_3 = arith.constant 0 : index
    %c0_4 = arith.constant 0 : index
    %c0_5 = arith.constant 0 : index
    %2 = vector.load %arg1[%c0_3, %c0_4, %c0_5] : memref<2x4x256xf32, #tpu.memory_space<vmem>>, vector<1x4x256xf32>
    %3 = vector.shape_cast %2 : vector<1x4x256xf32> to vector<4x256xf32>
    %cst = arith.constant dense<0.000000e+00> : vector<32x256xf32>
    %4 = tpu.matmul %0, %3, %cst {dimension_numbers = #tpu.dot_dimension_numbers<[1], [0], [0], [1], [0, 0, 1, 1], [], []>} : vector<32x4xf32>, vector<4x256xf32>, vector<32x256xf32> -> vector<32x256xf32>
    %5 = vector.broadcast %1 : vector<32x1xf32> to vector<32x256xf32>
    %6 = arith.addf %4, %5 : vector<32x256xf32>
    %cst_6 = arith.constant 0.000000e+00 : f32
    %7 = vector.broadcast %cst_6 : f32 to vector<32x256xf32>
    %8 = arith.maximumf %6, %7 : vector<32x256xf32>
    %cst_7 = arith.constant dense<0.000000e+00> : vector<32xf32>
    %9 = vector.multi_reduction <add>, %8, %cst_7 [1] : vector<32x256xf32> to vector<32xf32>
    %10 = vector.shape_cast %9 : vector<32xf32> to vector<32x1xf32>
    %cst_8 = arith.constant 2.560000e+02 : f32
    %11 = vector.broadcast %cst_8 : f32 to vector<32x1xf32>
    %12 = arith.divf %10, %11 : vector<32x1xf32>
    %c1 = arith.constant 1 : index
    %c0_9 = arith.constant 0 : index
    %c0_10 = arith.constant 0 : index
    %13 = vector.load %arg1[%c1, %c0_9, %c0_10] : memref<2x4x256xf32, #tpu.memory_space<vmem>>, vector<1x4x256xf32>
    %14 = vector.shape_cast %13 : vector<1x4x256xf32> to vector<4x256xf32>
    %cst_11 = arith.constant dense<0.000000e+00> : vector<32x256xf32>
    %15 = tpu.matmul %0, %14, %cst_11 {dimension_numbers = #tpu.dot_dimension_numbers<[1], [0], [0], [1], [0, 0, 1, 1], [], []>} : vector<32x4xf32>, vector<4x256xf32>, vector<32x256xf32> -> vector<32x256xf32>
    %16 = vector.broadcast %1 : vector<32x1xf32> to vector<32x256xf32>
    %17 = arith.addf %15, %16 : vector<32x256xf32>
    %cst_12 = arith.constant 0.000000e+00 : f32
    %18 = vector.broadcast %cst_12 : f32 to vector<32x256xf32>
    %19 = arith.maximumf %17, %18 : vector<32x256xf32>
    %cst_13 = arith.constant dense<0.000000e+00> : vector<32xf32>
    %20 = vector.multi_reduction <add>, %19, %cst_13 [1] : vector<32x256xf32> to vector<32xf32>
    %21 = vector.shape_cast %20 : vector<32xf32> to vector<32x1xf32>
    %cst_14 = arith.constant 2.560000e+02 : f32
    %22 = vector.broadcast %cst_14 : f32 to vector<32x1xf32>
    %23 = arith.divf %21, %22 : vector<32x1xf32>
    %24 = tpu.concatenate %12, %23 in 1 : vector<32x1xf32>, vector<32x1xf32> -> vector<32x2xf32>
    %c0_15 = arith.constant 0 : index
    %c0_16 = arith.constant 0 : index
    %25 = vector.load %arg4[%c0_15, %c0_16] : memref<32x10xf32, #tpu.memory_space<vmem>>, vector<32x10xf32>
    %cst_17 = arith.constant dense<0.000000e+00> : vector<2x10xf32>
    %26 = tpu.matmul %24, %25, %cst_17 {dimension_numbers = #tpu.dot_dimension_numbers<[0], [0], [1], [1], [0, 1, 1, 1], [], []>} : vector<32x2xf32>, vector<32x10xf32>, vector<2x10xf32> -> vector<2x10xf32>
    %c0_18 = arith.constant 0 : index
    %c0_19 = arith.constant 0 : index
    %27 = vector.load %arg5[%c0_18, %c0_19] : memref<1x10xf32, #tpu.memory_space<vmem>>, vector<1x10xf32>
    %28 = vector.broadcast %27 : vector<1x10xf32> to vector<2x10xf32>
    %29 = arith.addf %26, %28 : vector<2x10xf32>
    %c0_20 = arith.constant 0 : index
    %c0_21 = arith.constant 0 : index
    %30 = vector.load %arg6[%c0_20, %c0_21] : memref<2x10xf32, #tpu.memory_space<vmem>>, vector<2x10xf32>
    tpu.vector_store %arg6[%c0_20, %c0_21], %29 {strides = array<i32>} : memref<2x10xf32, #tpu.memory_space<vmem>>, vector<2x10xf32>,
    return
  }
  func.func @transform_0(%arg0: i32) -> (i32, i32, i32) {
    %c0_i32 = arith.constant 0 : i32
    %c0_i32_0 = arith.constant 0 : i32
    %c0_i32_1 = arith.constant 0 : i32
    %c0_i32_2 = arith.constant 0 : i32
    return %c0_i32, %c0_i32_0, %c0_i32_1 : i32, i32, i32
  }
  func.func @transform_1(%arg0: i32) -> (i32, i32) {
    %c0_i32 = arith.constant 0 : i32
    %c0_i32_0 = arith.constant 0 : i32
    %c0_i32_1 = arith.constant 0 : i32
    return %c0_i32, %c0_i32_0 : i32, i32
  }
  func.func @transform_2(%arg0: i32) -> (i32, i32) {
    %c0_i32 = arith.constant 0 : i32
    %c0_i32_0 = arith.constant 0 : i32
    %c0_i32_1 = arith.constant 0 : i32
    return %c0_i32, %c0_i32_0 : i32, i32
  }
  func.func @transform_3(%arg0: i32) -> (i32, i32) {
    %c0_i32 = arith.constant 0 : i32
    %c0_i32_0 = arith.constant 0 : i32
    %c0_i32_1 = arith.constant 0 : i32
    return %c0_i32, %c0_i32_0 : i32, i32
  }
  func.func @transform_4(%arg0: i32) -> (i32, i32) {
    %c0_i32 = arith.constant 0 : i32
    %c0_i32_0 = arith.constant 0 : i32
    %c0_i32_1 = arith.constant 0 : i32
    return %c0_i32, %c0_i32_0 : i32, i32
  }
  func.func @transform_5(%arg0: i32) -> (i32, i32) {
    %c0_i32 = arith.constant 0 : i32
    %c0_i32_0 = arith.constant 0 : i32
    %c0_i32_1 = arith.constant 0 : i32
    return %c0_i32, %c0_i32_0 : i32, i32
  }
}

</mosaic_0001>

<bundles_post_ra>
// kernel: tpu_custom_call.1
= control target key start
LH: loop header
LB: loop body
LE: loop exit
PB: predicated region body
PF: predicated region fallthrough
CT: control target
= control target key end

     0   :  { %vm65_vm0 = vcmask 1043456   ;;  %v504_v4 = vmov 0.0   ;;  %vm52_vm1 = vcmask 31744   ;;  %v505_v6 = vmov 0   ;;  %s615_s0 = inlined_call_operand.vmem [shape: f32[2,4,256], index: 0, kind: input, shape index: {}]   ;;  %s616_s1 = inlined_call_operand.vmem [shape: f32[32,4], index: 1, kind: input, shape index: {}]   ;;  %s617_s2 = inlined_call_operand.vmem [shape: f32[32,1], index: 2, kind: input, shape index: {}]   ;;  %s618_s3 = inlined_call_operand.vmem [shape: f32[32,10], index: 3, kind: input, shape index: {}]   ;;  %s619_s4 = inlined_call_operand.vmem [shape: f32[1,10], index: 4, kind: input, shape index: {}]   ;;  %s620_s5 = inlined_call_operand.hbm [shape: f32[2,10], index: 5, kind: output, shape index: {}]  }
   0x1   :  { %v29_v0 = vld [vmem:[%s615_s0] sm:$0xff]  ;;  %v449_v1 = vld [vmem:[%s615_s0 + $0x8] sm:$0xff]  ;;  %134 = vmatprep.mubr.f32.mxu0 %v504_v4  ;;  %256 = vmatprep.mubr.f32.mxu1 %v504_v4 }
   0x2   :  { %v51_v2 = vcombine.high %v29_v0, %v29_v0  ;;  %v187_v3 = vcombine.high %v449_v1, %v449_v1  ;;  %v21_v5 = vld [vmem:[%s616_s1] sm:$0xff]  ;;  %478 = vset.pattern.permute.xlu0 %v505_v6  ;;  %479 = vset.pattern.permute.xlu1 %v505_v6 }
   0x4   :  { %443 = vmatprep.subr.msk.mxu0 %vm65_vm0, %v51_v2  ;;  %450 = vmatprep.subr.msk.mxu1 %vm65_vm0, %v187_v3 }
   0x5   :  { %10 = vsyncpa [#allocation3], 0  ;;  %444 = vmatpush1.msk.msra.mxu0 %vm65_vm0, %v29_v0  ;;  %451 = vmatpush1.msk.msra.mxu1 %vm65_vm0, %v449_v1  ;;  %v25_v7 = vld [vmem:[%s617_s2] sm:$0xff]  ;;  %v27_v8 = vld [vmem:[%s617_s2 + $0x10] sm:$0xff]  ;;  %vm506_vm2 = vmmov 0   ;;  %vm305_vm3 = vcmask 7168  }
   0x6   :  { %445 = vmatmul.mubr.msk.f32.vlgmr.msra.gmra.mxu0 %vm52_vm1, %v21_v5  ;;  %452 = vmatmul.mubr.msk.f32.vlgmr.msra.gmra.mxu1 %vm52_vm1, %v21_v5  ;;  %v22_v9 = vld [vmem:[%s616_s1 + $0x8] sm:$0xff]  ;;  %v28_v11 = vld [vmem:[%s617_s2 + $0x18] sm:$0xff]  ;;  %v23_v12 = vld [vmem:[%s616_s1 + $0x10] sm:$0xff]  ;;  %vm353_vm4 = vcmask 261120   ;;  %s507_s19 = smov [#allocation2]   ;;  %vm427_vm5 = vcmask 74752  }
   0x7   :  { %140 = vmatprep.mubr.f32.mxu0 %v504_v4  ;;  %262 = vmatprep.mubr.f32.mxu1 %v504_v4  ;;  %v26_v10 = vld [vmem:[%s617_s2 + $0x8] sm:$0xff]  ;;  %v24_v13 = vld [vmem:[%s616_s1 + $0x18] sm:$0xff]  ;;  %s435_s20 = sshll.u32 %s507_s19, 4  ;;  %s436_s20 = int_to_ptr.vmem [resolvable:$true] %s435_s20 }
   0x8   :  { %32 = vperm.xlu0 %478, %v25_v7   ;;  %42 = vperm.xlu1 %479, %v27_v8   ;;  %s482_s21 = scalar_lea.vmem %s436_s20, 32  ;;  %p487_p1 = scmp.lt.s32.totalorder %s436_s20, %s436_s20 }
   0x9   :  { %463 = vmatprep.subr.mxu0 %v504_v4  ;;  %p483_p0 = scmp.ne.s32.totalorder %s436_s20, %s482_s21  ;;  %p488_p2 = scmp.lt.s32.totalorder %s482_s21, %s482_s21 }
   0xa   :  { %446 = vmatmul.mubr.msk.f32.gmra.mxu0 %vm52_vm1, %v22_v9  ;;  %453 = vmatmul.mubr.msk.f32.gmra.mxu1 %vm52_vm1, %v22_v9 }
   0xb   :  { %146 = vmatprep.mubr.f32.mxu0 %v504_v4  ;;  %268 = vmatprep.mubr.f32.mxu1 %v504_v4  ;;  %p489_p3 = por %p488_p2, %p487_p1 }
   0xc   :  { %37 = vperm.xlu0 %478, %v26_v10   ;;  %47 = vperm.xlu1 %479, %v28_v11   ;;  %v313_v11 = vld [vmem:[%s618_s3 + $0x18] sm:$0xff] }
   0xd   :  { %464 = vmatpush3.msra.mxu0 %v313_v11  ;;  %p490_p4 = pnand %p489_p3, %p483_p0 }
   0xe   :  { %447 = vmatmul.mubr.msk.f32.gmra.mxu0 %vm52_vm1, %v23_v12  ;;  %454 = vmatmul.mubr.msk.f32.gmra.mxu1 %vm52_vm1, %v23_v12  ;;  %v312_v12 = vld [vmem:[%s618_s3 + $0x10] sm:$0xff] }
   0xf   :  { %152 = vmatprep.mubr.f32.mxu0 %v504_v4  ;;  %274 = vmatprep.mubr.f32.mxu1 %v504_v4 }
  0x10   :  { %465 = vmatprep.subr.mxu0 %v504_v4 }
  0x11   :  { %466 = vmatpush3.msra.mxu0 %v312_v12 }
  0x12   :  { %448 = vmatmul.mubr.msk.f32.gmra.mxu0 %vm52_vm1, %v24_v13  ;;  %455 = vmatmul.mubr.msk.f32.gmra.mxu1 %vm52_vm1, %v24_v13  ;;  %v311_v13 = vld [vmem:[%s618_s3 + $0x8] sm:$0xff] }
  0x13   :  { %471 = vmatprep.mubr.msk.f32.mxu0 %vm506_vm2, %v504_v4  ;;  %467 = vmatprep.subr.mxu0 %v504_v4 }
  0x14   :  { %468 = vmatpush3.msra.mxu0 %v311_v13 }
  0x15   :  { %469 = vmatprep.subr.mxu0 %v504_v4 }
  0x83   :  { %v33_v14 = vpop.permute.xlu0 %32  ;;  %v43_v24 = vpop.permute.xlu1 %42 }
  0x87   :  { %v38_v21 = vpop.permute.xlu0 %37  ;;  %v48_v43 = vpop.permute.xlu1 %47 }
  0xc6   :  { %v136_v15 = vpop.f32.mrf.mxu0  ;;  %v258_v16 = vpop.f32.mrf.mxu1 }
  0xc7   :  { %v259_v17 = vadd.f32 %v258_v16, %v33_v14  ;;  %v137_v18 = vadd.f32 %v136_v15, %v33_v14 }
  0xc8   :  { %v138_v19 = vpop.f32.mrf.mxu0  ;;  %v260_v20 = vpop.f32.mrf.mxu1 }
  0xc9   :  { %v139_v22 = vadd.f32 %v138_v19, %v33_v14  ;;  %v261_v23 = vadd.f32 %v260_v20, %v33_v14  ;;  %v281_v25 = vmax.f32 %v259_v17, 0.0  ;;  %v159_v31 = vmax.f32 %v137_v18, 0.0  ;;  %v310_v14 = vld [vmem:[%s618_s3] sm:$0xff] }
  0xca   :  { %v142_v26 = vpop.f32.mrf.mxu0  ;;  %v264_v27 = vpop.f32.mrf.mxu1  ;;  %470 = vmatpush3.msra.mxu0 %v310_v14 }
  0xcb   :  { %v160_v28 = vmax.f32 %v139_v22, 0.0  ;;  %v282_v29 = vmax.f32 %v261_v23, 0.0  ;;  %v143_v30 = vadd.f32 %v142_v26, %v38_v21  ;;  %v265_v41 = vadd.f32 %v264_v27, %v38_v21 }
  0xcc   :  { %v144_v32 = vpop.f32.mrf.mxu0  ;;  %v266_v33 = vpop.f32.mrf.mxu1 }
  0xcd   :  { %v145_v34 = vadd.f32 %v144_v32, %v38_v21  ;;  %v267_v35 = vadd.f32 %v266_v33, %v38_v21  ;;  %v289_v38 = vadd.f32 %v282_v29, %v281_v25  ;;  %v167_v39 = vadd.f32 %v160_v28, %v159_v31 }
  0xce   :  { %v148_v36 = vpop.f32.mrf.mxu0  ;;  %v270_v37 = vpop.f32.mrf.mxu1  ;;  %v161_v40 = vmax.f32 %v143_v30, 0.0  ;;  %v283_v55 = vmax.f32 %v265_v41, 0.0 }
  0xcf   :  { %v162_v42 = vmax.f32 %v145_v34, 0.0  ;;  %v149_v44 = vadd.f32 %v148_v36, %v43_v24  ;;  %290 = vadd.xlane.f32.xlu1 %v289_v38  ;;  %168 = vadd.xlane.f32.xlu0 %v167_v39  ;;  %v284_v47 = vmax.f32 %v267_v35, 0.0  ;;  %v271_v54 = vadd.f32 %v270_v37, %v43_v24  ;;  %v456_v35 = vld [vmem:[%s619_s4] ss:$0 sm:$0xff] }
  0xd0   :  { %v150_v45 = vpop.f32.mrf.mxu0  ;;  %v272_v46 = vpop.f32.mrf.mxu1 }
  0xd1   :  { %v151_v48 = vadd.f32 %v150_v45, %v43_v24  ;;  %v170_v49 = vadd.f32 %v162_v42, %v161_v40  ;;  %v163_v50 = vmax.f32 %v149_v44, 0.0  ;;  %v273_v51 = vadd.f32 %v272_v46, %v43_v24 }
  0xd2   :  { %v154_v52 = vpop.f32.mrf.mxu0  ;;  %v276_v53 = vpop.f32.mrf.mxu1  ;;  %v292_v62 = vadd.f32 %v284_v47, %v283_v55  ;;  %v285_v2 = vmax.f32 %v271_v54, 0.0 }
  0xd3   :  { %v164_v56 = vmax.f32 %v151_v48, 0.0  ;;  %v155_v57 = vadd.f32 %v154_v52, %v48_v43  ;;  %171 = vadd.xlane.f32.xlu0 %v170_v49  ;;  %v286_v0 = vmax.f32 %v273_v51, 0.0  ;;  %v277_v3 = vadd.f32 %v276_v53, %v48_v43 }
  0xd4   :  { %v156_v58 = vpop.f32.mrf.mxu0  ;;  %v278_v59 = vpop.f32.mrf.mxu1 }
  0xd5   :  { %v157_v60 = vadd.f32 %v156_v58, %v48_v43  ;;  %v173_v61 = vadd.f32 %v164_v56, %v163_v50  ;;  %v165_v63 = vmax.f32 %v155_v57, 0.0  ;;  %v279_v1 = vadd.f32 %v278_v59, %v48_v43 }
  0xd6   :  { %v295_v8 = vadd.f32 %v286_v0, %v285_v2  ;;  %v287_v9 = vmax.f32 %v277_v3, 0.0 }
  0xd7   :  { %v166_v5 = vmax.f32 %v157_v60, 0.0  ;;  %174 = vadd.xlane.f32.xlu1 %v173_v61  ;;  %293 = vadd.xlane.f32.xlu0 %v292_v62  ;;  %v288_v7 = vmax.f32 %v279_v1, 0.0 }
  0xd9   :  { %v176_v6 = vadd.f32 %v166_v5, %v165_v63  ;;  %v298_v10 = vadd.f32 %v288_v7, %v287_v9 }
  0xdb   :  { %177 = vadd.xlane.f32.xlu1 %v176_v6  ;;  %296 = vadd.xlane.f32.xlu0 %v295_v8 }
  0xdf   :  { %299 = vadd.xlane.f32.xlu0 %v298_v10 }
 0x158   :  { %v291_v15 = vpop.xlane.xlu1 %290  ;;  %v169_v16 = vpop.xlane.xlu0 %168 }
 0x159   :  { %v301_v17 = vmul.f32 0.00390625, %v291_v15  ;;  %v180_v18 = vmul.f32 0.00390625, %v169_v16 }
 0x15b   :  { %v306_v19 = vsel %vm305_vm3, %v180_v18, %v301_v17 }
 0x15c   :  { %321 = vxpose.xlu1.b32.start [1/4] (short) (narrow) %v306_v19, 8  ;;  %v172_v20 = vpop.xlane.xlu0 %171 }
 0x15d   :  { %v181_v23 = vmul.f32 0.00390625, %v172_v20 }
 0x160   :  { %v175_v21 = vpop.xlane.xlu1 %174  ;;  %v294_v22 = vpop.xlane.xlu0 %293 }
 0x161   :  { %v302_v24 = vmul.f32 0.00390625, %v294_v22  ;;  %v182_v27 = vmul.f32 0.00390625, %v175_v21 }
 0x163   :  { %v307_v25 = vsel %vm305_vm3, %v181_v23, %v302_v24 }
 0x164   :  { %322 = vxpose.xlu1.b32.cont [2/4] (short) (narrow) %v307_v25, 8  ;;  %v297_v26 = vpop.xlane.xlu0 %296  ;;  %v178_v28 = vpop.xlane.xlu1 %177 }
 0x165   :  { %v303_v4 = vmul.f32 0.00390625, %v297_v26  ;;  %v183_v31 = vmul.f32 0.00390625, %v178_v28 }
 0x167   :  { %v308_v29 = vsel %vm305_vm3, %v182_v27, %v303_v4 }
 0x168   :  { %323 = vxpose.xlu1.b32.cont [3/4] (short) (narrow) %v308_v29, 8  ;;  %v300_v30 = vpop.xlane.xlu0 %299 }
 0x169   :  { %v304_v32 = vmul.f32 0.00390625, %v300_v30 }
 0x16b   :  { %v309_v33 = vsel %vm305_vm3, %v183_v31, %v304_v32 }
 0x16c   :  { %324 = vxpose.xlu1.b32.end [4/4] (short) (narrow) %v309_v33, 8 }
 0x1dc   :  { %v337_v34 = vpop.trf.xlu1 }
 0x1dd   :  { %472 = vmatmul.mubr.msk.f32.vlgmr.msra.gmra.mxu0 %vm353_vm4, %v337_v34 }
 0x29d   :  { %v423_v36 = vpop.f32.mrf.mxu0 }
 0x29e   :  { %v424_v37 = vadd.f32 %v456_v35, %v423_v36 }
 0x29f   :  { %v473_v38 = vpop.f32.mrf.mxu0 }
 0x2a0   :  { %428 = vst.msk [vmem:[#allocation2] sm:$0x3] %vm427_vm5, %v424_v37 }
 0x2a1   :  { %493 = shalt.err (!%p490_p4)
}
 0x2a2   :  { %438 = dma.vmem_to_hbm [thread:$0]  %s436_s20, 32, %s620_s5, [#allocation3]  }
 0x2a3   :  { %502 = dma.done.wait [#allocation3], 32  }
 0x2a4   :  { %503 = vsyncadd [#allocation3], 4294967264 }
 0x2a5   :  { %442 = vsyncpa [#allocation3], 1 }

</bundles_post_ra>
